<compile_context>
chip_gen: v5e
topology: v5e:2x2
jax: 0.10.0
libtpu: 0.0.40
codegen_flags: <defaults>
</compile_context>

<pallas_src>
import jax
import jax.numpy as jnp
from jax.experimental import pallas as pl
from jax.experimental.pallas import tpu as pltpu

# ----------------------------- configuration --------------------------------
BATCH = 2
SEQ = 2                       # fixed by pos_encoding shape (1, 2, hidden_dim)
INPUT_DIM = 32
HIDDEN_DIM = 32
OUTPUT_DIM = 32
NUM_HEADS = 4
NUM_LAYERS = 2
FF_DIM = HIDDEN_DIM * 4       # 128
HEAD_DIM = HIDDEN_DIM // NUM_HEADS
LN_EPS = 1e-5
ATTN_SCALE = 1.0 / float(HEAD_DIM) ** 0.5
LANE = 128                    # lane width; every slab is 128 lanes wide
SB = SEQ * BATCH              # tokens per instance (seq-major rows: s*BATCH + b)

# --------------------- weight-slab row offsets (static) ----------------------
W_IN_OFF = 0                                   # (32, 128)  cols 0:32
W_PER_LAYER = 32 + 32 + 32 + FF_DIM            # qkv + wo + w1 + w2 = 224 rows
W_LAYER0 = 32
QKV_OFF, WO_OFF, W1_OFF, W2_OFF = 0, 32, 64, 96
WO1_OFF = W_LAYER0 + NUM_LAYERS * W_PER_LAYER  # 480, (32, 128) cols 0:16
WO2_OFF = WO1_OFF + HIDDEN_DIM                 # 512, (16, 128) cols 0:32 (un-padded)
E_OFF = WO2_OFF + HIDDEN_DIM // 2              # 528, head-indicator (32, 4)
ET_OFF = E_OFF + HIDDEN_DIM                    # 560, head-broadcast (4, 32)
W_ROWS = ET_OFF + NUM_HEADS                    # 564

# --------------------- bias-slab row offsets (static) ------------------------
B_PER_LAYER = 8     # bqkv, bo, b1, b2, ln1w, ln1b, ln2w, ln2b
BQKV_R, BO_R, B1_R, B2_R, LN1W_R, LN1B_R, LN2W_R, LN2B_R = range(8)
B_TAIL = NUM_LAYERS * B_PER_LAYER              # 16: bo1, 17: bo2
PB_R = B_TAIL + 2                              # 18..21: pos_encoding + input bias
B_ROWS = PB_R + SB                             # 22


# ------------------------------ shared math ----------------------------------
def _layer_norm(x, w, b):
    mu = jnp.mean(x, axis=-1, keepdims=True)
    xc = x - mu
    var = jnp.mean(xc * xc, axis=-1, keepdims=True)
    return xc * jax.lax.rsqrt(var + LN_EPS) * w + b


# ------------------------------ Pallas kernel --------------------------------
def transformer_kernel(x_ref, w_ref, b_ref, out_ref):
    f32 = jnp.float32
    D = HIDDEN_DIM
    B = BATCH

    def wsl(off, n):                       # (n, 128) static slice of weight slab
        return w_ref[off:off + n, :]

    def brow(r):                           # (1, 128) bias / LN row
        return b_ref[r:r + 1, :]

    x = x_ref[0:SB, 0:INPUT_DIM]           # (4, 32)  seq-major rows: s*B + b
    posbias = b_ref[PB_R:PB_R + SB, :]     # (4, 128) pos_encoding + input bias

    # input projection (padded weight -> 128-wide result, keep leading 32 cols)
    h = (jnp.dot(x, wsl(W_IN_OFF, INPUT_DIM), preferred_element_type=f32)
         + posbias)[:, :D]                                            # (4, 32)

    # structural matrices (hoisted out of the layer loop)
    E = wsl(E_OFF, D)[:, :NUM_HEADS]       # (32, 4)  feature -> per-head sum
    Et = wsl(ET_OFF, NUM_HEADS)[:, :D]     # (4, 32)  head -> feature broadcast

    for l in range(NUM_LAYERS):
        WL = W_LAYER0 + l * W_PER_LAYER
        BL = l * B_PER_LAYER

        # --- fused Q|K|V projection: single MXU push ---
        qkv = jnp.dot(h, wsl(WL + QKV_OFF, D),
                      preferred_element_type=f32) + brow(BL + BQKV_R)  # (4, 128)
        q = qkv[:, 0:D]                    # (4, 32)
        k = qkv[:, D:2 * D]
        v = qkv[:, 2 * D:3 * D]

        # "other sequence position" copies: swap the two sublane halves
        # (seq-major layout: rows [0:B] = position 0, rows [B:2B] = position 1)
        k_other = jnp.concatenate([k[B:SB, :], k[0:B, :]], axis=0)     # (4, 32)
        v_other = jnp.concatenate([v[B:SB, :], v[0:B, :]], axis=0)

        # per-head scores vs the same-position key and the other-position key
        s_same = jnp.dot(q * k, E, preferred_element_type=f32) * ATTN_SCALE
        s_other = jnp.dot(q * k_other, E, preferred_element_type=f32) * ATTN_SCALE

        # softmax over the (length-2) key axis -- exact normalization
        m = jnp.maximum(s_same, s_other)
        e_same = jnp.exp(s_same - m)
        e_other = jnp.exp(s_other - m)
        inv = 1.0 / (e_same + e_other)

        # head-weights -> per-feature broadcast, then weighted value sum
        wf_same = jnp.dot(e_same * inv, Et, preferred_element_type=f32)   # (4, 32)
        wf_other = jnp.dot(e_other * inv, Et, preferred_element_type=f32)
        attn = wf_same * v + wf_other * v_other                           # (4, 32)

        # output projection
        attn = (jnp.dot(attn, wsl(WL + WO_OFF, D), preferred_element_type=f32)
                + brow(BL + BO_R))[:, :D]                                 # (4, 32)

        # post-norm encoder layer (dropout = identity in inference)
        h = _layer_norm(h + attn,
                        brow(BL + LN1W_R)[:, :D], brow(BL + LN1B_R)[:, :D])
        ff = jnp.maximum(
            jnp.dot(h, wsl(WL + W1_OFF, D), preferred_element_type=f32)
            + brow(BL + B1_R), 0.0)                                       # (4, 128)
        ff = (jnp.dot(ff, wsl(WL + W2_OFF, FF_DIM), preferred_element_type=f32)
              + brow(BL + B2_R))[:, :D]                                   # (4, 32)
        h = _layer_norm(h + ff,
                        brow(BL + LN2W_R)[:, :D], brow(BL + LN2B_R)[:, :D])

    # mean over the sequence axis: just add the two sublane halves
    pooled = (h[0:B, :] + h[B:SB, :]) * (1.0 / SEQ)                       # (B, 32)

    # output MLP head (dropout = identity); result stays 128-lane dense
    o = jnp.maximum(jnp.dot(pooled, wsl(WO1_OFF, D), preferred_element_type=f32)
                    + brow(B_TAIL + 0), 0.0)                              # (B, 128)
    o = (jnp.dot(o[:, :HIDDEN_DIM // 2], wsl(WO2_OFF, HIDDEN_DIM // 2),
                 preferred_element_type=f32)
         + brow(B_TAIL + 1))                                              # (B, 128)
    out_ref[...] = o


# ------------------------------ wrapper / glue --------------------------------
def _dense_init(key, fan_in, fan_out):
    # PyTorch nn.Linear default init: U(-1/sqrt(fan_in), 1/sqrt(fan_in))
    k1, k2 = jax.random.split(key)
    bound = 1.0 / float(fan_in) ** 0.5
    w = jax.random.uniform(k1, (fan_in, fan_out), jnp.float32, -bound, bound)
    b = jax.random.uniform(k2, (1, fan_out), jnp.float32, -bound, bound)
    return w, b


def init_params(key):
    keys = jax.random.split(key, 8 + NUM_LAYERS)
    p = {}
    p["w_in"], p["b_in"] = _dense_init(keys[0], INPUT_DIM, HIDDEN_DIM)
    p["pos"] = jax.random.normal(keys[1], (1, SEQ, HIDDEN_DIM), jnp.float32)
    p["layers"] = []
    for l in range(NUM_LAYERS):
        lk = jax.random.split(keys[2 + l], 6)
        lp = {}
        lp["wq"], lp["bq"] = _dense_init(lk[0], HIDDEN_DIM, HIDDEN_DIM)
        lp["wk"], lp["bk"] = _dense_init(lk[1], HIDDEN_DIM, HIDDEN_DIM)
        lp["wv"], lp["bv"] = _dense_init(lk[2], HIDDEN_DIM, HIDDEN_DIM)
        lp["wo"], lp["bo"] = _dense_init(lk[3], HIDDEN_DIM, HIDDEN_DIM)
        lp["w1"], lp["b1"] = _dense_init(lk[4], HIDDEN_DIM, FF_DIM)
        lp["w2"], lp["b2"] = _dense_init(lk[5], FF_DIM, HIDDEN_DIM)
        lp["ln1w"] = jnp.ones((1, HIDDEN_DIM), jnp.float32)
        lp["ln1b"] = jnp.zeros((1, HIDDEN_DIM), jnp.float32)
        lp["ln2w"] = jnp.ones((1, HIDDEN_DIM), jnp.float32)
        lp["ln2b"] = jnp.zeros((1, HIDDEN_DIM), jnp.float32)
        p["layers"].append(lp)
    p["wo1"], p["bo1"] = _dense_init(keys[2 + NUM_LAYERS], HIDDEN_DIM, HIDDEN_DIM // 2)
    p["wo2"], p["bo2"] = _dense_init(keys[3 + NUM_LAYERS], HIDDEN_DIM // 2, OUTPUT_DIM)
    return p


def _pad_cols(a):
    return jnp.pad(a, ((0, 0), (0, LANE - a.shape[1])))


def _bias_row(a):
    a = a.reshape(1, -1)
    return jnp.pad(a, ((0, 0), (0, LANE - a.shape[1])))


def build_slabs(p):
    """Pack all parameters into one weight slab and one bias/pos slab (128 lanes).

    Called ONCE at init (hoisted out of the per-call path)."""
    wp = [_pad_cols(p["w_in"])]                                        # rows 0:32
    for lp in p["layers"]:
        wqkv = jnp.concatenate([lp["wq"], lp["wk"], lp["wv"]], axis=1)  # (32, 96)
        wp += [_pad_cols(wqkv), _pad_cols(lp["wo"]),
               _pad_cols(lp["w1"]), _pad_cols(lp["w2"])]
    wp += [_pad_cols(p["wo1"]), _pad_cols(p["wo2"])]                   # wo2: (16,128)
    E = jnp.repeat(jnp.eye(NUM_HEADS, dtype=jnp.float32), HEAD_DIM, axis=0)  # (32, 4)
    wp += [_pad_cols(E), _pad_cols(E.T)]
    wslab = jnp.concatenate(wp, axis=0)
    assert wslab.shape == (W_ROWS, LANE)

    bp = []
    for lp in p["layers"]:
        bqkv = jnp.concatenate([lp["bq"], lp["bk"], lp["bv"]], axis=1)  # (1, 96)
        bp += [_bias_row(bqkv), _bias_row(lp["bo"]),
               _bias_row(lp["b1"]), _bias_row(lp["b2"]),
               _bias_row(lp["ln1w"]), _bias_row(lp["ln1b"]),
               _bias_row(lp["ln2w"]), _bias_row(lp["ln2b"])]
    bp += [_bias_row(p["bo1"]), _bias_row(p["bo2"])]
    # fold pos_encoding + input bias into the slab: seq-major rows s*B + b
    posbias = jnp.repeat(p["pos"].reshape(SEQ, HIDDEN_DIM), BATCH, axis=0) + p["b_in"]
    bp += [_pad_cols(posbias)]
    bslab = jnp.concatenate(bp, axis=0)
    assert bslab.shape == (B_ROWS, LANE)
    return wslab, bslab


def frequency_transformer_forward(x, wslab, bslab):
    B, S, Din = x.shape
    # seq-major token layout (row = s*B + b), padded to one full (8,128) tile
    x2d = jnp.transpose(x, (1, 0, 2)).reshape(S * B, Din)
    x2d = jnp.pad(x2d, ((0, 8 - S * B), (0, LANE - Din)))

    out = pl.pallas_call(
        transformer_kernel,
        out_shape=jax.ShapeDtypeStruct((B, LANE), jnp.float32),
        in_specs=[pl.BlockSpec(memory_space=pltpu.MemorySpace.VMEM)] * 3,
        out_specs=pl.BlockSpec(memory_space=pltpu.MemorySpace.VMEM),
        cost_estimate=pl.CostEstimate(flops=220_000, transcendentals=128,
                                      bytes_accessed=305_152),
    )(x2d, wslab, bslab)
    return out[:, :OUTPUT_DIM]


forward_jit = jax.jit(frequency_transformer_forward)


# -------------------------- pure-JAX reference --------------------------------
def reference_forward(x, p):
    B, S, _ = x.shape
    h = x @ p["w_in"] + p["b_in"]
    h = h + p["pos"]
    for lp in p["layers"]:
        q = (h @ lp["wq"] + lp["bq"]).reshape(B, S, NUM_HEADS, HEAD_DIM)
        k = (h @ lp["wk"] + lp["bk"]).reshape(B, S, NUM_HEADS, HEAD_DIM)
        v = (h @ lp["wv"] + lp["bv"]).reshape(B, S, NUM_HEADS, HEAD_DIM)
        scores = jnp.einsum("bqhd,bkhd->bhqk", q, k) * ATTN_SCALE
        pr = jax.nn.softmax(scores, axis=-1)
        a = jnp.einsum("bhqk,bkhd->bqhd", pr, v).reshape(B, S, HIDDEN_DIM)
        a = a @ lp["wo"] + lp["bo"]
        h = _layer_norm(h + a, lp["ln1w"], lp["ln1b"])
        ff = jax.nn.relu(h @ lp["w1"] + lp["b1"]) @ lp["w2"] + lp["b2"]
        h = _layer_norm(h + ff, lp["ln2w"], lp["ln2b"])
    pooled = h.mean(axis=1)
    o = jax.nn.relu(pooled @ p["wo1"] + p["bo1"]) @ p["wo2"] + p["bo2"]
    return o


# ----------------------------------- main --------------------------------------
if __name__ == "__main__":
    key = jax.random.PRNGKey(0)
    kx, kp = jax.random.split(key)
    x = jax.random.normal(kx, (BATCH, SEQ, INPUT_DIM), dtype=jnp.float32)
    params = init_params(kp)

    # hoisted: build the parameter slabs ONCE (not in the per-call hot path)
    wslab, bslab = jax.block_until_ready(build_slabs(params))

    out = forward_jit(x, wslab, bslab)
    out = jax.block_until_ready(out)

    ref = reference_forward(x, params)
    assert out.shape == (BATCH, OUTPUT_DIM)
    assert jnp.allclose(out, ref, atol=1e-4, rtol=1e-4), float(jnp.max(jnp.abs(out - ref)))
    # TODO(synk): dropout layers are identity (inference mode); training-mode RNG dropout not modeled.
    print("KERNEL_OK")
</pallas_src>

<mosaic_0001>
module attributes {stable_mosaic.version = 11 : i64} {
  func.func @transformer_kernel(%arg0: memref<8x128xf32, #tpu.memory_space<vmem>>, %arg1: memref<564x128xf32, #tpu.memory_space<vmem>>, %arg2: memref<22x128xf32, #tpu.memory_space<vmem>>, %arg3: memref<2x128xf32, #tpu.memory_space<vmem>>) attributes {dimension_semantics = [], scalar_prefetch = 0 : i64, scratch_operands = 0 : i64, tpu.core_type = #tpu.core_type<tc>} {
    %c0 = arith.constant 0 : index
    %c0_0 = arith.constant 0 : index
    %0 = vector.load %arg0[%c0, %c0_0] : memref<8x128xf32, #tpu.memory_space<vmem>>, vector<4x32xf32>
    %c18 = arith.constant 18 : index
    %c0_1 = arith.constant 0 : index
    %1 = vector.load %arg2[%c18, %c0_1] : memref<22x128xf32, #tpu.memory_space<vmem>>, vector<4x128xf32>
    %c0_2 = arith.constant 0 : index
    %c0_3 = arith.constant 0 : index
    %2 = vector.load %arg1[%c0_2, %c0_3] : memref<564x128xf32, #tpu.memory_space<vmem>>, vector<32x128xf32>
    %cst = arith.constant dense<0.000000e+00> : vector<4x128xf32>
    %3 = tpu.matmul %0, %2, %cst {dimension_numbers = #tpu.dot_dimension_numbers<[1], [0], [0], [1], [0, 0, 1, 1], [], []>} : vector<4x32xf32>, vector<32x128xf32>, vector<4x128xf32> -> vector<4x128xf32>
    %4 = arith.addf %3, %1 : vector<4x128xf32>
    %5 = vector.extract_strided_slice %4 {offsets = [0, 0], sizes = [4, 32], strides = [1, 1]} : vector<4x128xf32> to vector<4x32xf32>
    %c528 = arith.constant 528 : index
    %c0_4 = arith.constant 0 : index
    %6 = vector.load %arg1[%c528, %c0_4] : memref<564x128xf32, #tpu.memory_space<vmem>>, vector<32x128xf32>
    %7 = vector.extract_strided_slice %6 {offsets = [0, 0], sizes = [32, 4], strides = [1, 1]} : vector<32x128xf32> to vector<32x4xf32>
    %c560 = arith.constant 560 : index
    %c0_5 = arith.constant 0 : index
    %8 = vector.load %arg1[%c560, %c0_5] : memref<564x128xf32, #tpu.memory_space<vmem>>, vector<4x128xf32>
    %9 = vector.extract_strided_slice %8 {offsets = [0, 0], sizes = [4, 32], strides = [1, 1]} : vector<4x128xf32> to vector<4x32xf32>
    %c32 = arith.constant 32 : index
    %c0_6 = arith.constant 0 : index
    %10 = vector.load %arg1[%c32, %c0_6] : memref<564x128xf32, #tpu.memory_space<vmem>>, vector<32x128xf32>
    %cst_7 = arith.constant dense<0.000000e+00> : vector<4x128xf32>
    %11 = tpu.matmul %5, %10, %cst_7 {dimension_numbers = #tpu.dot_dimension_numbers<[1], [0], [0], [1], [0, 0, 1, 1], [], []>} : vector<4x32xf32>, vector<32x128xf32>, vector<4x128xf32> -> vector<4x128xf32>
    %c0_8 = arith.constant 0 : index
    %c0_9 = arith.constant 0 : index
    %12 = vector.load %arg2[%c0_8, %c0_9] : memref<22x128xf32, #tpu.memory_space<vmem>>, vector<1x128xf32>
    %13 = vector.broadcast %12 : vector<1x128xf32> to vector<4x128xf32>
    %14 = arith.addf %11, %13 : vector<4x128xf32>
    %15 = vector.extract_strided_slice %14 {offsets = [0, 0], sizes = [4, 32], strides = [1, 1]} : vector<4x128xf32> to vector<4x32xf32>
    %16 = vector.extract_strided_slice %14 {offsets = [0, 32], sizes = [4, 32], strides = [1, 1]} : vector<4x128xf32> to vector<4x32xf32>
    %17 = vector.extract_strided_slice %14 {offsets = [0, 64], sizes = [4, 32], strides = [1, 1]} : vector<4x128xf32> to vector<4x32xf32>
    %18 = vector.extract_strided_slice %16 {offsets = [2, 0], sizes = [2, 32], strides = [1, 1]} : vector<4x32xf32> to vector<2x32xf32>
    %19 = vector.extract_strided_slice %16 {offsets = [0, 0], sizes = [2, 32], strides = [1, 1]} : vector<4x32xf32> to vector<2x32xf32>
    %20 = tpu.concatenate %18, %19 in 0 : vector<2x32xf32>, vector<2x32xf32> -> vector<4x32xf32>
    %21 = vector.extract_strided_slice %17 {offsets = [2, 0], sizes = [2, 32], strides = [1, 1]} : vector<4x32xf32> to vector<2x32xf32>
    %22 = vector.extract_strided_slice %17 {offsets = [0, 0], sizes = [2, 32], strides = [1, 1]} : vector<4x32xf32> to vector<2x32xf32>
    %23 = tpu.concatenate %21, %22 in 0 : vector<2x32xf32>, vector<2x32xf32> -> vector<4x32xf32>
    %24 = arith.mulf %15, %16 : vector<4x32xf32>
    %cst_10 = arith.constant dense<0.000000e+00> : vector<4x4xf32>
    %25 = tpu.matmul %24, %7, %cst_10 {dimension_numbers = #tpu.dot_dimension_numbers<[1], [0], [0], [1], [0, 0, 1, 1], [], []>} : vector<4x32xf32>, vector<32x4xf32>, vector<4x4xf32> -> vector<4x4xf32>
    %cst_11 = arith.constant 0.353553385 : f32
    %26 = vector.broadcast %cst_11 : f32 to vector<4x4xf32>
    %27 = arith.mulf %25, %26 : vector<4x4xf32>
    %28 = arith.mulf %15, %20 : vector<4x32xf32>
    %cst_12 = arith.constant dense<0.000000e+00> : vector<4x4xf32>
    %29 = tpu.matmul %28, %7, %cst_12 {dimension_numbers = #tpu.dot_dimension_numbers<[1], [0], [0], [1], [0, 0, 1, 1], [], []>} : vector<4x32xf32>, vector<32x4xf32>, vector<4x4xf32> -> vector<4x4xf32>
    %cst_13 = arith.constant 0.353553385 : f32
    %30 = vector.broadcast %cst_13 : f32 to vector<4x4xf32>
    %31 = arith.mulf %29, %30 : vector<4x4xf32>
    %32 = arith.maximumf %27, %31 : vector<4x4xf32>
    %33 = arith.subf %27, %32 : vector<4x4xf32>
    %34 = math.exp %33 : vector<4x4xf32>
    %35 = arith.subf %31, %32 : vector<4x4xf32>
    %36 = math.exp %35 : vector<4x4xf32>
    %37 = arith.addf %34, %36 : vector<4x4xf32>
    %cst_14 = arith.constant 1.000000e+00 : f32
    %38 = vector.broadcast %cst_14 : f32 to vector<4x4xf32>
    %39 = arith.divf %38, %37 : vector<4x4xf32>
    %40 = arith.mulf %34, %39 : vector<4x4xf32>
    %cst_15 = arith.constant dense<0.000000e+00> : vector<4x32xf32>
    %41 = tpu.matmul %40, %9, %cst_15 {dimension_numbers = #tpu.dot_dimension_numbers<[1], [0], [0], [1], [0, 0, 1, 1], [], []>} : vector<4x4xf32>, vector<4x32xf32>, vector<4x32xf32> -> vector<4x32xf32>
    %42 = arith.mulf %36, %39 : vector<4x4xf32>
    %cst_16 = arith.constant dense<0.000000e+00> : vector<4x32xf32>
    %43 = tpu.matmul %42, %9, %cst_16 {dimension_numbers = #tpu.dot_dimension_numbers<[1], [0], [0], [1], [0, 0, 1, 1], [], []>} : vector<4x4xf32>, vector<4x32xf32>, vector<4x32xf32> -> vector<4x32xf32>
    %44 = arith.mulf %41, %17 : vector<4x32xf32>
    %45 = arith.mulf %43, %23 : vector<4x32xf32>
    %46 = arith.addf %44, %45 : vector<4x32xf32>
    %c64 = arith.constant 64 : index
    %c0_17 = arith.constant 0 : index
    %47 = vector.load %arg1[%c64, %c0_17] : memref<564x128xf32, #tpu.memory_space<vmem>>, vector<32x128xf32>
    %cst_18 = arith.constant dense<0.000000e+00> : vector<4x128xf32>
    %48 = tpu.matmul %46, %47, %cst_18 {dimension_numbers = #tpu.dot_dimension_numbers<[1], [0], [0], [1], [0, 0, 1, 1], [], []>} : vector<4x32xf32>, vector<32x128xf32>, vector<4x128xf32> -> vector<4x128xf32>
    %c1 = arith.constant 1 : index
    %c0_19 = arith.constant 0 : index
    %49 = vector.load %arg2[%c1, %c0_19] : memref<22x128xf32, #tpu.memory_space<vmem>>, vector<1x128xf32>
    %50 = vector.broadcast %49 : vector<1x128xf32> to vector<4x128xf32>
    %51 = arith.addf %48, %50 : vector<4x128xf32>
    %52 = vector.extract_strided_slice %51 {offsets = [0, 0], sizes = [4, 32], strides = [1, 1]} : vector<4x128xf32> to vector<4x32xf32>
    %53 = arith.addf %5, %52 : vector<4x32xf32>
    %c4 = arith.constant 4 : index
    %c0_20 = arith.constant 0 : index
    %54 = vector.load %arg2[%c4, %c0_20] : memref<22x128xf32, #tpu.memory_space<vmem>>, vector<1x128xf32>
    %55 = vector.extract_strided_slice %54 {offsets = [0, 0], sizes = [1, 32], strides = [1, 1]} : vector<1x128xf32> to vector<1x32xf32>
    %c5 = arith.constant 5 : index
    %c0_21 = arith.constant 0 : index
    %56 = vector.load %arg2[%c5, %c0_21] : memref<22x128xf32, #tpu.memory_space<vmem>>, vector<1x128xf32>
    %57 = vector.extract_strided_slice %56 {offsets = [0, 0], sizes = [1, 32], strides = [1, 1]} : vector<1x128xf32> to vector<1x32xf32>
    %cst_22 = arith.constant dense<0.000000e+00> : vector<4xf32>
    %58 = vector.multi_reduction <add>, %53, %cst_22 [1] : vector<4x32xf32> to vector<4xf32>
    %59 = vector.shape_cast %58 : vector<4xf32> to vector<4x1xf32>
    %cst_23 = arith.constant 3.200000e+01 : f32
    %60 = vector.broadcast %cst_23 : f32 to vector<4x1xf32>
    %61 = arith.divf %59, %60 : vector<4x1xf32>
    %62 = vector.broadcast %61 : vector<4x1xf32> to vector<4x32xf32>
    %63 = arith.subf %53, %62 : vector<4x32xf32>
    %64 = arith.mulf %63, %63 : vector<4x32xf32>
    %cst_24 = arith.constant dense<0.000000e+00> : vector<4xf32>
    %65 = vector.multi_reduction <add>, %64, %cst_24 [1] : vector<4x32xf32> to vector<4xf32>
    %66 = vector.shape_cast %65 : vector<4xf32> to vector<4x1xf32>
    %cst_25 = arith.constant 3.200000e+01 : f32
    %67 = vector.broadcast %cst_25 : f32 to vector<4x1xf32>
    %68 = arith.divf %66, %67 : vector<4x1xf32>
    %cst_26 = arith.constant 9.99999974E-6 : f32
    %69 = vector.broadcast %cst_26 : f32 to vector<4x1xf32>
    %70 = arith.addf %68, %69 : vector<4x1xf32>
    %71 = math.rsqrt %70 : vector<4x1xf32>
    %72 = vector.broadcast %71 : vector<4x1xf32> to vector<4x32xf32>
    %73 = arith.mulf %63, %72 : vector<4x32xf32>
    %74 = vector.broadcast %55 : vector<1x32xf32> to vector<4x32xf32>
    %75 = arith.mulf %73, %74 : vector<4x32xf32>
    %76 = vector.broadcast %57 : vector<1x32xf32> to vector<4x32xf32>
    %77 = arith.addf %75, %76 : vector<4x32xf32>
    %c96 = arith.constant 96 : index
    %c0_27 = arith.constant 0 : index
    %78 = vector.load %arg1[%c96, %c0_27] : memref<564x128xf32, #tpu.memory_space<vmem>>, vector<32x128xf32>
    %cst_28 = arith.constant dense<0.000000e+00> : vector<4x128xf32>
    %79 = tpu.matmul %77, %78, %cst_28 {dimension_numbers = #tpu.dot_dimension_numbers<[1], [0], [0], [1], [0, 0, 1, 1], [], []>} : vector<4x32xf32>, vector<32x128xf32>, vector<4x128xf32> -> vector<4x128xf32>
    %c2 = arith.constant 2 : index
    %c0_29 = arith.constant 0 : index
    %80 = vector.load %arg2[%c2, %c0_29] : memref<22x128xf32, #tpu.memory_space<vmem>>, vector<1x128xf32>
    %81 = vector.broadcast %80 : vector<1x128xf32> to vector<4x128xf32>
    %82 = arith.addf %79, %81 : vector<4x128xf32>
    %cst_30 = arith.constant 0.000000e+00 : f32
    %83 = vector.broadcast %cst_30 : f32 to vector<4x128xf32>
    %84 = arith.maximumf %82, %83 : vector<4x128xf32>
    %c128 = arith.constant 128 : index
    %c0_31 = arith.constant 0 : index
    %85 = vector.load %arg1[%c128, %c0_31] : memref<564x128xf32, #tpu.memory_space<vmem>>, vector<128x128xf32>
    %cst_32 = arith.constant dense<0.000000e+00> : vector<4x128xf32>
    %86 = tpu.matmul %84, %85, %cst_32 {dimension_numbers = #tpu.dot_dimension_numbers<[1], [0], [0], [1], [0, 0, 1, 1], [], []>} : vector<4x128xf32>, vector<128x128xf32>, vector<4x128xf32> -> vector<4x128xf32>
    %c3 = arith.constant 3 : index
    %c0_33 = arith.constant 0 : index
    %87 = vector.load %arg2[%c3, %c0_33] : memref<22x128xf32, #tpu.memory_space<vmem>>, vector<1x128xf32>
    %88 = vector.broadcast %87 : vector<1x128xf32> to vector<4x128xf32>
    %89 = arith.addf %86, %88 : vector<4x128xf32>
    %90 = vector.extract_strided_slice %89 {offsets = [0, 0], sizes = [4, 32], strides = [1, 1]} : vector<4x128xf32> to vector<4x32xf32>
    %91 = arith.addf %77, %90 : vector<4x32xf32>
    %c6 = arith.constant 6 : index
    %c0_34 = arith.constant 0 : index
    %92 = vector.load %arg2[%c6, %c0_34] : memref<22x128xf32, #tpu.memory_space<vmem>>, vector<1x128xf32>
    %93 = vector.extract_strided_slice %92 {offsets = [0, 0], sizes = [1, 32], strides = [1, 1]} : vector<1x128xf32> to vector<1x32xf32>
    %c7 = arith.constant 7 : index
    %c0_35 = arith.constant 0 : index
    %94 = vector.load %arg2[%c7, %c0_35] : memref<22x128xf32, #tpu.memory_space<vmem>>, vector<1x128xf32>
    %95 = vector.extract_strided_slice %94 {offsets = [0, 0], sizes = [1, 32], strides = [1, 1]} : vector<1x128xf32> to vector<1x32xf32>
    %cst_36 = arith.constant dense<0.000000e+00> : vector<4xf32>
    %96 = vector.multi_reduction <add>, %91, %cst_36 [1] : vector<4x32xf32> to vector<4xf32>
    %97 = vector.shape_cast %96 : vector<4xf32> to vector<4x1xf32>
    %cst_37 = arith.constant 3.200000e+01 : f32
    %98 = vector.broadcast %cst_37 : f32 to vector<4x1xf32>
    %99 = arith.divf %97, %98 : vector<4x1xf32>
    %100 = vector.broadcast %99 : vector<4x1xf32> to vector<4x32xf32>
    %101 = arith.subf %91, %100 : vector<4x32xf32>
    %102 = arith.mulf %101, %101 : vector<4x32xf32>
    %cst_38 = arith.constant dense<0.000000e+00> : vector<4xf32>
    %103 = vector.multi_reduction <add>, %102, %cst_38 [1] : vector<4x32xf32> to vector<4xf32>
    %104 = vector.shape_cast %103 : vector<4xf32> to vector<4x1xf32>
    %cst_39 = arith.constant 3.200000e+01 : f32
    %105 = vector.broadcast %cst_39 : f32 to vector<4x1xf32>
    %106 = arith.divf %104, %105 : vector<4x1xf32>
    %cst_40 = arith.constant 9.99999974E-6 : f32
    %107 = vector.broadcast %cst_40 : f32 to vector<4x1xf32>
    %108 = arith.addf %106, %107 : vector<4x1xf32>
    %109 = math.rsqrt %108 : vector<4x1xf32>
    %110 = vector.broadcast %109 : vector<4x1xf32> to vector<4x32xf32>
    %111 = arith.mulf %101, %110 : vector<4x32xf32>
    %112 = vector.broadcast %93 : vector<1x32xf32> to vector<4x32xf32>
    %113 = arith.mulf %111, %112 : vector<4x32xf32>
    %114 = vector.broadcast %95 : vector<1x32xf32> to vector<4x32xf32>
    %115 = arith.addf %113, %114 : vector<4x32xf32>
    %c256 = arith.constant 256 : index
    %c0_41 = arith.constant 0 : index
    %116 = vector.load %arg1[%c256, %c0_41] : memref<564x128xf32, #tpu.memory_space<vmem>>, vector<32x128xf32>
    %cst_42 = arith.constant dense<0.000000e+00> : vector<4x128xf32>
    %117 = tpu.matmul %115, %116, %cst_42 {dimension_numbers = #tpu.dot_dimension_numbers<[1], [0], [0], [1], [0, 0, 1, 1], [], []>} : vector<4x32xf32>, vector<32x128xf32>, vector<4x128xf32> -> vector<4x128xf32>
    %c8 = arith.constant 8 : index
    %c0_43 = arith.constant 0 : index
    %118 = vector.load %arg2[%c8, %c0_43] : memref<22x128xf32, #tpu.memory_space<vmem>>, vector<1x128xf32>
    %119 = vector.broadcast %118 : vector<1x128xf32> to vector<4x128xf32>
    %120 = arith.addf %117, %119 : vector<4x128xf32>
    %121 = vector.extract_strided_slice %120 {offsets = [0, 0], sizes = [4, 32], strides = [1, 1]} : vector<4x128xf32> to vector<4x32xf32>
    %122 = vector.extract_strided_slice %120 {offsets = [0, 32], sizes = [4, 32], strides = [1, 1]} : vector<4x128xf32> to vector<4x32xf32>
    %123 = vector.extract_strided_slice %120 {offsets = [0, 64], sizes = [4, 32], strides = [1, 1]} : vector<4x128xf32> to vector<4x32xf32>
    %124 = vector.extract_strided_slice %122 {offsets = [2, 0], sizes = [2, 32], strides = [1, 1]} : vector<4x32xf32> to vector<2x32xf32>
    %125 = vector.extract_strided_slice %122 {offsets = [0, 0], sizes = [2, 32], strides = [1, 1]} : vector<4x32xf32> to vector<2x32xf32>
    %126 = tpu.concatenate %124, %125 in 0 : vector<2x32xf32>, vector<2x32xf32> -> vector<4x32xf32>
    %127 = vector.extract_strided_slice %123 {offsets = [2, 0], sizes = [2, 32], strides = [1, 1]} : vector<4x32xf32> to vector<2x32xf32>
    %128 = vector.extract_strided_slice %123 {offsets = [0, 0], sizes = [2, 32], strides = [1, 1]} : vector<4x32xf32> to vector<2x32xf32>
    %129 = tpu.concatenate %127, %128 in 0 : vector<2x32xf32>, vector<2x32xf32> -> vector<4x32xf32>
    %130 = arith.mulf %121, %122 : vector<4x32xf32>
    %cst_44 = arith.constant dense<0.000000e+00> : vector<4x4xf32>
    %131 = tpu.matmul %130, %7, %cst_44 {dimension_numbers = #tpu.dot_dimension_numbers<[1], [0], [0], [1], [0, 0, 1, 1], [], []>} : vector<4x32xf32>, vector<32x4xf32>, vector<4x4xf32> -> vector<4x4xf32>
    %cst_45 = arith.constant 0.353553385 : f32
    %132 = vector.broadcast %cst_45 : f32 to vector<4x4xf32>
    %133 = arith.mulf %131, %132 : vector<4x4xf32>
    %134 = arith.mulf %121, %126 : vector<4x32xf32>
    %cst_46 = arith.constant dense<0.000000e+00> : vector<4x4xf32>
    %135 = tpu.matmul %134, %7, %cst_46 {dimension_numbers = #tpu.dot_dimension_numbers<[1], [0], [0], [1], [0, 0, 1, 1], [], []>} : vector<4x32xf32>, vector<32x4xf32>, vector<4x4xf32> -> vector<4x4xf32>
    %cst_47 = arith.constant 0.353553385 : f32
    %136 = vector.broadcast %cst_47 : f32 to vector<4x4xf32>
    %137 = arith.mulf %135, %136 : vector<4x4xf32>
    %138 = arith.maximumf %133, %137 : vector<4x4xf32>
    %139 = arith.subf %133, %138 : vector<4x4xf32>
    %140 = math.exp %139 : vector<4x4xf32>
    %141 = arith.subf %137, %138 : vector<4x4xf32>
    %142 = math.exp %141 : vector<4x4xf32>
    %143 = arith.addf %140, %142 : vector<4x4xf32>
    %cst_48 = arith.constant 1.000000e+00 : f32
    %144 = vector.broadcast %cst_48 : f32 to vector<4x4xf32>
    %145 = arith.divf %144, %143 : vector<4x4xf32>
    %146 = arith.mulf %140, %145 : vector<4x4xf32>
    %cst_49 = arith.constant dense<0.000000e+00> : vector<4x32xf32>
    %147 = tpu.matmul %146, %9, %cst_49 {dimension_numbers = #tpu.dot_dimension_numbers<[1], [0], [0], [1], [0, 0, 1, 1], [], []>} : vector<4x4xf32>, vector<4x32xf32>, vector<4x32xf32> -> vector<4x32xf32>
    %148 = arith.mulf %142, %145 : vector<4x4xf32>
    %cst_50 = arith.constant dense<0.000000e+00> : vector<4x32xf32>
    %149 = tpu.matmul %148, %9, %cst_50 {dimension_numbers = #tpu.dot_dimension_numbers<[1], [0], [0], [1], [0, 0, 1, 1], [], []>} : vector<4x4xf32>, vector<4x32xf32>, vector<4x32xf32> -> vector<4x32xf32>
    %150 = arith.mulf %147, %123 : vector<4x32xf32>
    %151 = arith.mulf %149, %129 : vector<4x32xf32>
    %152 = arith.addf %150, %151 : vector<4x32xf32>
    %c288 = arith.constant 288 : index
    %c0_51 = arith.constant 0 : index
    %153 = vector.load %arg1[%c288, %c0_51] : memref<564x128xf32, #tpu.memory_space<vmem>>, vector<32x128xf32>
    %cst_52 = arith.constant dense<0.000000e+00> : vector<4x128xf32>
    %154 = tpu.matmul %152, %153, %cst_52 {dimension_numbers = #tpu.dot_dimension_numbers<[1], [0], [0], [1], [0, 0, 1, 1], [], []>} : vector<4x32xf32>, vector<32x128xf32>, vector<4x128xf32> -> vector<4x128xf32>
    %c9 = arith.constant 9 : index
    %c0_53 = arith.constant 0 : index
    %155 = vector.load %arg2[%c9, %c0_53] : memref<22x128xf32, #tpu.memory_space<vmem>>, vector<1x128xf32>
    %156 = vector.broadcast %155 : vector<1x128xf32> to vector<4x128xf32>
    %157 = arith.addf %154, %156 : vector<4x128xf32>
    %158 = vector.extract_strided_slice %157 {offsets = [0, 0], sizes = [4, 32], strides = [1, 1]} : vector<4x128xf32> to vector<4x32xf32>
    %159 = arith.addf %115, %158 : vector<4x32xf32>
    %c12 = arith.constant 12 : index
    %c0_54 = arith.constant 0 : index
    %160 = vector.load %arg2[%c12, %c0_54] : memref<22x128xf32, #tpu.memory_space<vmem>>, vector<1x128xf32>
    %161 = vector.extract_strided_slice %160 {offsets = [0, 0], sizes = [1, 32], strides = [1, 1]} : vector<1x128xf32> to vector<1x32xf32>
    %c13 = arith.constant 13 : index
    %c0_55 = arith.constant 0 : index
    %162 = vector.load %arg2[%c13, %c0_55] : memref<22x128xf32, #tpu.memory_space<vmem>>, vector<1x128xf32>
    %163 = vector.extract_strided_slice %162 {offsets = [0, 0], sizes = [1, 32], strides = [1, 1]} : vector<1x128xf32> to vector<1x32xf32>
    %cst_56 = arith.constant dense<0.000000e+00> : vector<4xf32>
    %164 = vector.multi_reduction <add>, %159, %cst_56 [1] : vector<4x32xf32> to vector<4xf32>
    %165 = vector.shape_cast %164 : vector<4xf32> to vector<4x1xf32>
    %cst_57 = arith.constant 3.200000e+01 : f32
    %166 = vector.broadcast %cst_57 : f32 to vector<4x1xf32>
    %167 = arith.divf %165, %166 : vector<4x1xf32>
    %168 = vector.broadcast %167 : vector<4x1xf32> to vector<4x32xf32>
    %169 = arith.subf %159, %168 : vector<4x32xf32>
    %170 = arith.mulf %169, %169 : vector<4x32xf32>
    %cst_58 = arith.constant dense<0.000000e+00> : vector<4xf32>
    %171 = vector.multi_reduction <add>, %170, %cst_58 [1] : vector<4x32xf32> to vector<4xf32>
    %172 = vector.shape_cast %171 : vector<4xf32> to vector<4x1xf32>
    %cst_59 = arith.constant 3.200000e+01 : f32
    %173 = vector.broadcast %cst_59 : f32 to vector<4x1xf32>
    %174 = arith.divf %172, %173 : vector<4x1xf32>
    %cst_60 = arith.constant 9.99999974E-6 : f32
    %175 = vector.broadcast %cst_60 : f32 to vector<4x1xf32>
    %176 = arith.addf %174, %175 : vector<4x1xf32>
    %177 = math.rsqrt %176 : vector<4x1xf32>
    %178 = vector.broadcast %177 : vector<4x1xf32> to vector<4x32xf32>
    %179 = arith.mulf %169, %178 : vector<4x32xf32>
    %180 = vector.broadcast %161 : vector<1x32xf32> to vector<4x32xf32>
    %181 = arith.mulf %179, %180 : vector<4x32xf32>
    %182 = vector.broadcast %163 : vector<1x32xf32> to vector<4x32xf32>
    %183 = arith.addf %181, %182 : vector<4x32xf32>
    %c320 = arith.constant 320 : index
    %c0_61 = arith.constant 0 : index
    %184 = vector.load %arg1[%c320, %c0_61] : memref<564x128xf32, #tpu.memory_space<vmem>>, vector<32x128xf32>
    %cst_62 = arith.constant dense<0.000000e+00> : vector<4x128xf32>
    %185 = tpu.matmul %183, %184, %cst_62 {dimension_numbers = #tpu.dot_dimension_numbers<[1], [0], [0], [1], [0, 0, 1, 1], [], []>} : vector<4x32xf32>, vector<32x128xf32>, vector<4x128xf32> -> vector<4x128xf32>
    %c10 = arith.constant 10 : index
    %c0_63 = arith.constant 0 : index
    %186 = vector.load %arg2[%c10, %c0_63] : memref<22x128xf32, #tpu.memory_space<vmem>>, vector<1x128xf32>
    %187 = vector.broadcast %186 : vector<1x128xf32> to vector<4x128xf32>
    %188 = arith.addf %185, %187 : vector<4x128xf32>
    %cst_64 = arith.constant 0.000000e+00 : f32
    %189 = vector.broadcast %cst_64 : f32 to vector<4x128xf32>
    %190 = arith.maximumf %188, %189 : vector<4x128xf32>
    %c352 = arith.constant 352 : index
    %c0_65 = arith.constant 0 : index
    %191 = vector.load %arg1[%c352, %c0_65] : memref<564x128xf32, #tpu.memory_space<vmem>>, vector<128x128xf32>
    %cst_66 = arith.constant dense<0.000000e+00> : vector<4x128xf32>
    %192 = tpu.matmul %190, %191, %cst_66 {dimension_numbers = #tpu.dot_dimension_numbers<[1], [0], [0], [1], [0, 0, 1, 1], [], []>} : vector<4x128xf32>, vector<128x128xf32>, vector<4x128xf32> -> vector<4x128xf32>
    %c11 = arith.constant 11 : index
    %c0_67 = arith.constant 0 : index
    %193 = vector.load %arg2[%c11, %c0_67] : memref<22x128xf32, #tpu.memory_space<vmem>>, vector<1x128xf32>
    %194 = vector.broadcast %193 : vector<1x128xf32> to vector<4x128xf32>
    %195 = arith.addf %192, %194 : vector<4x128xf32>
    %196 = vector.extract_strided_slice %195 {offsets = [0, 0], sizes = [4, 32], strides = [1, 1]} : vector<4x128xf32> to vector<4x32xf32>
    %197 = arith.addf %183, %196 : vector<4x32xf32>
    %c14 = arith.constant 14 : index
    %c0_68 = arith.constant 0 : index
    %198 = vector.load %arg2[%c14, %c0_68] : memref<22x128xf32, #tpu.memory_space<vmem>>, vector<1x128xf32>
    %199 = vector.extract_strided_slice %198 {offsets = [0, 0], sizes = [1, 32], strides = [1, 1]} : vector<1x128xf32> to vector<1x32xf32>
    %c15 = arith.constant 15 : index
    %c0_69 = arith.constant 0 : index
    %200 = vector.load %arg2[%c15, %c0_69] : memref<22x128xf32, #tpu.memory_space<vmem>>, vector<1x128xf32>
    %201 = vector.extract_strided_slice %200 {offsets = [0, 0], sizes = [1, 32], strides = [1, 1]} : vector<1x128xf32> to vector<1x32xf32>
    %cst_70 = arith.constant dense<0.000000e+00> : vector<4xf32>
    %202 = vector.multi_reduction <add>, %197, %cst_70 [1] : vector<4x32xf32> to vector<4xf32>
    %203 = vector.shape_cast %202 : vector<4xf32> to vector<4x1xf32>
    %cst_71 = arith.constant 3.200000e+01 : f32
    %204 = vector.broadcast %cst_71 : f32 to vector<4x1xf32>
    %205 = arith.divf %203, %204 : vector<4x1xf32>
    %206 = vector.broadcast %205 : vector<4x1xf32> to vector<4x32xf32>
    %207 = arith.subf %197, %206 : vector<4x32xf32>
    %208 = arith.mulf %207, %207 : vector<4x32xf32>
    %cst_72 = arith.constant dense<0.000000e+00> : vector<4xf32>
    %209 = vector.multi_reduction <add>, %208, %cst_72 [1] : vector<4x32xf32> to vector<4xf32>
    %210 = vector.shape_cast %209 : vector<4xf32> to vector<4x1xf32>
    %cst_73 = arith.constant 3.200000e+01 : f32
    %211 = vector.broadcast %cst_73 : f32 to vector<4x1xf32>
    %212 = arith.divf %210, %211 : vector<4x1xf32>
    %cst_74 = arith.constant 9.99999974E-6 : f32
    %213 = vector.broadcast %cst_74 : f32 to vector<4x1xf32>
    %214 = arith.addf %212, %213 : vector<4x1xf32>
    %215 = math.rsqrt %214 : vector<4x1xf32>
    %216 = vector.broadcast %215 : vector<4x1xf32> to vector<4x32xf32>
    %217 = arith.mulf %207, %216 : vector<4x32xf32>
    %218 = vector.broadcast %199 : vector<1x32xf32> to vector<4x32xf32>
    %219 = arith.mulf %217, %218 : vector<4x32xf32>
    %220 = vector.broadcast %201 : vector<1x32xf32> to vector<4x32xf32>
    %221 = arith.addf %219, %220 : vector<4x32xf32>
    %222 = vector.extract_strided_slice %221 {offsets = [0, 0], sizes = [2, 32], strides = [1, 1]} : vector<4x32xf32> to vector<2x32xf32>
    %223 = vector.extract_strided_slice %221 {offsets = [2, 0], sizes = [2, 32], strides = [1, 1]} : vector<4x32xf32> to vector<2x32xf32>
    %224 = arith.addf %222, %223 : vector<2x32xf32>
    %cst_75 = arith.constant 5.000000e-01 : f32
    %225 = vector.broadcast %cst_75 : f32 to vector<2x32xf32>
    %226 = arith.mulf %224, %225 : vector<2x32xf32>
    %c480 = arith.constant 480 : index
    %c0_76 = arith.constant 0 : index
    %227 = vector.load %arg1[%c480, %c0_76] : memref<564x128xf32, #tpu.memory_space<vmem>>, vector<32x128xf32>
    %cst_77 = arith.constant dense<0.000000e+00> : vector<2x128xf32>
    %228 = tpu.matmul %226, %227, %cst_77 {dimension_numbers = #tpu.dot_dimension_numbers<[1], [0], [0], [1], [0, 0, 1, 1], [], []>} : vector<2x32xf32>, vector<32x128xf32>, vector<2x128xf32> -> vector<2x128xf32>
    %c16 = arith.constant 16 : index
    %c0_78 = arith.constant 0 : index
    %229 = vector.load %arg2[%c16, %c0_78] : memref<22x128xf32, #tpu.memory_space<vmem>>, vector<1x128xf32>
    %230 = vector.broadcast %229 : vector<1x128xf32> to vector<2x128xf32>
    %231 = arith.addf %228, %230 : vector<2x128xf32>
    %cst_79 = arith.constant 0.000000e+00 : f32
    %232 = vector.broadcast %cst_79 : f32 to vector<2x128xf32>
    %233 = arith.maximumf %231, %232 : vector<2x128xf32>
    %234 = vector.extract_strided_slice %233 {offsets = [0, 0], sizes = [2, 16], strides = [1, 1]} : vector<2x128xf32> to vector<2x16xf32>
    %c512 = arith.constant 512 : index
    %c0_80 = arith.constant 0 : index
    %235 = vector.load %arg1[%c512, %c0_80] : memref<564x128xf32, #tpu.memory_space<vmem>>, vector<16x128xf32>
    %cst_81 = arith.constant dense<0.000000e+00> : vector<2x128xf32>
    %236 = tpu.matmul %234, %235, %cst_81 {dimension_numbers = #tpu.dot_dimension_numbers<[1], [0], [0], [1], [0, 0, 1, 1], [], []>} : vector<2x16xf32>, vector<16x128xf32>, vector<2x128xf32> -> vector<2x128xf32>
    %c17 = arith.constant 17 : index
    %c0_82 = arith.constant 0 : index
    %237 = vector.load %arg2[%c17, %c0_82] : memref<22x128xf32, #tpu.memory_space<vmem>>, vector<1x128xf32>
    %238 = vector.broadcast %237 : vector<1x128xf32> to vector<2x128xf32>
    %239 = arith.addf %236, %238 : vector<2x128xf32>
    %c0_83 = arith.constant 0 : index
    %c0_84 = arith.constant 0 : index
    %240 = vector.load %arg3[%c0_83, %c0_84] : memref<2x128xf32, #tpu.memory_space<vmem>>, vector<2x128xf32>
    tpu.vector_store %arg3[%c0_83, %c0_84], %239 {strides = array<i32>} : memref<2x128xf32, #tpu.memory_space<vmem>>, vector<2x128xf32>,
    return
  }
}

</mosaic_0001>

<bundles_post_ra>
// kernel: frequency_transformer_forward.1
= control target key start
LH: loop header
LB: loop body
LE: loop exit
PB: predicated region body
PF: predicated region fallthrough
CT: control target
= control target key end

     0   :  { %8 = vsyncpa [#allocation3], 0  ;;  %s1114_s0 = inlined_call_operand.vmem [shape: f32[8,128], index: 0, kind: input, shape index: {}]   ;;  %s1115_s1 = inlined_call_operand.hbm [shape: f32[564,128], index: 1, kind: input, shape index: {}]   ;;  %s1116_s2 = inlined_call_operand.vmem [shape: f32[22,128], index: 2, kind: input, shape index: {}]   ;;  %s1117_s3 = inlined_call_operand.hbm [shape: f32[2,128], index: 3, kind: output, shape index: {}]  }
   0x1   :  { %9 = vsyncpa [#allocation4], 0  ;;  %s16_s14 = sshll.u32 %s1115_s1, 4  ;;  %s935_s15 = smov [#allocation2]   ;;  %s17_s14 = int_to_ptr.hbm [resolvable:$true] %s16_s14 }
   0x2   :  { %s18_s16 = sshll.u32 %s935_s15, 4  ;;  %s936_s17 = smov 128   ;;  %s19_s16 = int_to_ptr.vmem [resolvable:$true] %s18_s16 }
   0x3   :  { %s937_s18 = smov 8  }
   0x4   :  { %24 = dma.hbm_to_vmem [thread:$0]  %s17_s14, 9088, %s19_s16, [#allocation3], %s936_s17, %s936_s17, %s937_s18  }
   0x5   :  { %931 = dma.done.wait [#allocation3], 9088  }
   0x6   :  { %932 = vsyncadd [#allocation3], 4294958208  ;;  %v36_v0 = vld [vmem:[#allocation2 + $0x18] sm:$0xff]  ;;  %v35_v1 = vld [vmem:[#allocation2 + $0x10] sm:$0xff]  ;;  %vm37_vm0 = vcmask 261120   ;;  %s938_s23 = smov 64  }
   0x7   :  { %53 = vmatpush.msra.mxu0 %v36_v0  ;;  %v34_v2 = vld [vmem:[#allocation2 + $0x8] sm:$0xff]  ;;  %v69_v3 = vld [vmem:[#allocation2 + $0x38] sm:$0xff]  ;;  %v33_v4 = vld [vmem:[#allocation2] sm:$0xff]  ;;  %s939_s24 = smov 96   ;;  %vm100_vm1 = vcmask 1041408   ;;  %vm187_vm2 = vcmask 1043456  }
   0x8   :  { %87 = vmatpush.msra.mxu1 %v69_v3  ;;  %v68_v5 = vld [vmem:[#allocation2 + $0x30] sm:$0xff]  ;;  %v31_v6 = vld [vmem:[%s1114_s0] sm:$0xf]  ;;  %v67_v7 = vld [vmem:[#allocation2 + $0x28] sm:$0xff]  ;;  %vm183_vm7 = vcmask 31744   ;;  %vm276_vm8 = vcmask 257024  }
   0x9   :  { %54 = vmatpush.msra.mxu0 %v35_v1  ;;  %v66_v8 = vld [vmem:[#allocation2 + $0x20] sm:$0xff]  ;;  %v32_v9 = vld [vmem:[%s1116_s2 + $0x12] sm:$0xf]  ;;  %v976_v12 = vld [vmem:[#allocation2 + $0x228] sm:$0xff]  ;;  %v940_v3 = vmov 32.0   ;;  %s941_s30 = smov [#allocation5]  }
   0xa   :  { %88 = vmatpush.msra.mxu1 %v68_v5  ;;  %v978_v13 = vld [vmem:[#allocation2 + $0x220] sm:$0xff]  ;;  %121 = vmatpush.msra.mxu3 %v976_v12  ;;  %v981_v14 = vld [vmem:[#allocation2 + $0x218] sm:$0xff]  ;;  %v993_v21 = vld [vmem:[#allocation2 + $0x210] sm:$0xff]  ;;  %s803_s4 = sshll.u32 %s941_s30, 4  ;;  %s805_s7 = sshll.u32 %s1117_s3, 4  ;;  %s804_s4 = int_to_ptr.vmem [resolvable:$true] %s803_s4  ;;  %s806_s7 = int_to_ptr.hbm [resolvable:$true] %s805_s7 }
   0xb   :  { %55 = vmatpush.msra.mxu0 %v34_v2  ;;  %v843_v15 = vld [vmem:[%s1116_s2] ss:$0 sm:$0xff]  ;;  %v1002_v26 = vld [vmem:[#allocation2 + $0x230] sm:$0xf]  ;;  %v247_v34 = vld [vmem:[#allocation2 + $0x58] sm:$0xff] }
   0xc   :  { %89 = vmatpush.msra.mxu1 %v67_v7  ;;  %122 = vmatpush.msra.mxu3 %v978_v13  ;;  %v246_v52 = vld [vmem:[#allocation2 + $0x50] sm:$0xff]  ;;  %v245_v53 = vld [vmem:[#allocation2 + $0x48] sm:$0xff]  ;;  %v244_v54 = vld [vmem:[#allocation2 + $0x40] sm:$0xff] }
   0xd   :  { %56 = vmatpush.msra.mxu0 %v33_v4  ;;  %265 = vmatpush.msra.mxu2 %v247_v34  ;;  %v844_v62 = vld [vmem:[%s1116_s2 + $0x1] ss:$0 sm:$0xff]  ;;  %v347_v34 = vld [vmem:[#allocation2 + $0xb8] sm:$0xff] }
   0xe   :  { %815 = vmatmul.msk.f32.vlgmr.msra.gmra.mxu0 %vm37_vm0, %v31_v6  ;;  %90 = vmatpush.msra.mxu1 %v66_v8 }
   0xf   :  { %123 = vmatpush.msra.mxu3 %v981_v14  ;;  %819 = vmatpush.msk.msrb.mxu0 %vm187_vm2, %v1002_v26 }
  0x10   :  { %821 = vmatpush.msk.msrb.mxu1 %vm187_vm2, %v1002_v26  ;;  %266 = vmatpush.msra.mxu2 %v246_v52 }
  0x11   :  { %124 = vmatpush.msra.mxu3 %v993_v21 }
  0x12   :  { %267 = vmatpush.msra.mxu2 %v245_v53 }
  0x13   :  { %150 = vmatpush.msrb.mxu3 %v976_v12 }
  0x14   :  { %268 = vmatpush.msra.mxu2 %v244_v54 }
  0x15   :  { %151 = vmatpush.msrb.mxu3 %v978_v13 }
  0x16   :  { %461 = vmatpush.msrb.mxu2 %v976_v12 }
  0x17   :  { %152 = vmatpush.msrb.mxu3 %v981_v14 }
  0x18   :  { %462 = vmatpush.msrb.mxu2 %v978_v13 }
  0x19   :  { %153 = vmatpush.msrb.mxu3 %v993_v21 }
  0x1a   :  { %463 = vmatpush.msrb.mxu2 %v981_v14 }
  0x1c   :  { %464 = vmatpush.msrb.mxu2 %v993_v21 }
  0x8b   :  { %v58_v10 = vpop.f32.mrf.mxu0 }
  0x8c   :  { %v972_v11 = vadd.f32 %v58_v10, %v32_v9 }
  0x8e   :  { %816 = vmatmul.msk.f32.vlgmr.msra.gmra.mxu1 %vm37_vm0, %v972_v11 }
 0x10b   :  { %v92_v16 = vpop.f32.mrf.mxu1 }
 0x10c   :  { %v93_v17 = vadd.f32 %v843_v15, %v92_v16 }
 0x10e   :  { %235 = vrot.lane.b32.xlu1 %v93_v17, %s938_s23  ;;  %102 = vrot.lane.b32.xlu0 %v93_v17, %s939_s24  ;;  %v96_v18 = vrot.slane %v93_v17, 2  ;;  %v98_v19 = vrot.slane %v93_v17, 6 }
 0x110   :  { %v101_v20 = vsel %vm100_vm1, %v96_v18, %v98_v19  ;;  %v313_v18 = vld [vmem:[#allocation2 + $0x78] sm:$0xff]  ;;  %v312_v19 = vld [vmem:[#allocation2 + $0x70] sm:$0xff] }
 0x116   :  { %239 = vrot.lane.b32.xlu1 %v101_v20, %s938_s23  ;;  %131 = vrot.lane.b32.xlu0 %v101_v20, %s939_s24  ;;  %v311_v20 = vld [vmem:[#allocation2 + $0x68] sm:$0xff] }
 0x180   :  { %v103_v22 = vpop.permute.xlu0 %102  ;;  %v236_v55 = vpop.permute.xlu1 %235 }
 0x181   :  { %v105_v23 = vmul.f32 %v103_v22, %v93_v17  ;;  %v310_v22 = vld [vmem:[#allocation2 + $0x60] sm:$0xff] }
 0x183   :  { %817 = vmatmul.msk.f32.vlgmr.msra.gmra.mxu3 %vm37_vm0, %v105_v23  ;;  %v355_v23 = vld [vmem:[#allocation2 + $0xf8] sm:$0xff] }
 0x184   :  { %331 = vmatpush.msra.mxu3 %v313_v18  ;;  %358 = vmatpush.msra.mxu0 %v355_v23  ;;  %v849_v18 = vld [vmem:[%s1116_s2 + $0x6] ss:$0 sm:$0xff] }
 0x186   :  { %332 = vmatpush.msra.mxu3 %v312_v19 }
 0x188   :  { %v132_v24 = vpop.permute.xlu0 %131  ;;  %v240_v56 = vpop.permute.xlu1 %239  ;;  %333 = vmatpush.msra.mxu3 %v311_v20  ;;  %v850_v20 = vld [vmem:[%s1116_s2 + $0x7] ss:$0 sm:$0xff] }
 0x189   :  { %v134_v25 = vmul.f32 %v132_v24, %v93_v17  ;;  %v354_v24 = vld [vmem:[#allocation2 + $0xf0] sm:$0xff] }
 0x18a   :  { %334 = vmatpush.msra.mxu3 %v310_v22  ;;  %359 = vmatpush.msra.mxu0 %v354_v24  ;;  %v851_v24 = vld [vmem:[%s1116_s2 + $0x8] ss:$0 sm:$0xff] }
 0x18b   :  { %818 = vmatmul.msk.f32.vlgmr.msrb.gmra.mxu3 %vm37_vm0, %v134_v25  ;;  %v353_v25 = vld [vmem:[#allocation2 + $0xe8] sm:$0xff] }
 0x18c   :  { %490 = vmatpush.msrb.mxu3 %v976_v12  ;;  %360 = vmatpush.msra.mxu0 %v353_v25  ;;  %v349_v12 = vld [vmem:[#allocation2 + $0xc8] sm:$0xff] }
 0x18e   :  { %491 = vmatpush.msrb.mxu3 %v978_v13 }
 0x190   :  { %492 = vmatpush.msrb.mxu3 %v981_v14  ;;  %v345_v14 = vld [vmem:[#allocation2 + $0xa8] sm:$0xff] }
 0x192   :  { %493 = vmatpush.msrb.mxu3 %v993_v21 }
 0x206   :  { %v126_v27 = vpop.f32.mrf.mxu3 }
 0x207   :  { %v129_v29 = vmul.f32 0.35355338, %v126_v27 }
 0x20e   :  { %v155_v28 = vpop.f32.mrf.mxu3 }
 0x20f   :  { %v158_v30 = vmul.f32 0.35355338, %v155_v28 }
 0x211   :  { %v159_v31 = vmax.f32 %v129_v29, %v158_v30 }
 0x213   :  { %v160_v32 = vsub.f32 %v129_v29, %v159_v31  ;;  %v163_v33 = vsub.f32 %v158_v30, %v159_v31  ;;  %v352_v29 = vld [vmem:[#allocation2 + $0xe0] sm:$0xff]  ;;  %v351_v31 = vld [vmem:[#allocation2 + $0xd8] sm:$0xff] }
 0x214   :  { %361 = vmatpush.msra.mxu0 %v352_v29 }
 0x215   :  { %v161_v35 = vmul.f32 1.442695, %v160_v32  ;;  %v164_v36 = vmul.f32 1.442695, %v163_v33  ;;  %v350_v32 = vld [vmem:[#allocation2 + $0xd0] sm:$0xff]  ;;  %v348_v33 = vld [vmem:[#allocation2 + $0xc0] sm:$0xff] }
 0x216   :  { %362 = vmatpush.msra.mxu0 %v351_v31 }
 0x217   :  { %861 = vpow2.f32 %v161_v35 }
 0x218   :  { %863 = vpow2.f32 %v164_v36  ;;  %363 = vmatpush.msra.mxu0 %v350_v32  ;;  %v346_v36 = vld [vmem:[#allocation2 + $0xb0] sm:$0xff] }
 0x21a   :  { %364 = vmatpush.msra.mxu0 %v349_v12 }
 0x21c   :  { %365 = vmatpush.msra.mxu0 %v348_v33 }
 0x21d   :  { %v862_v37 = vpop.eup %861 }
 0x21e   :  { %v864_v38 = vpop.eup %863  ;;  %366 = vmatpush.msra.mxu0 %v347_v34 }
 0x21f   :  { %v166_v39 = vadd.f32 %v864_v38, %v862_v37 }
 0x220   :  { %367 = vmatpush.msra.mxu0 %v346_v36 }
 0x221   :  { %865 = vrcp.f32 %v166_v39  ;;  %v178_v43 = vand.u32 2147483648, %v166_v39  ;;  %v176_v45 = vand.u32 2147483647, %v166_v39  ;;  %vm172_vm4 = vweird.f32 %v166_v39 }
 0x222   :  { %867 = vrcp.f32 %v940_v3  ;;  %368 = vmatpush.msra.mxu0 %v345_v14  ;;  %v408_v3 = vld [vmem:[#allocation2 + $0x108] sm:$0xff] }
 0x223   :  { %v179_v47 = vor.u32 1.1754944e-38, %v178_v43  ;;  %vm177_vm6 = vcmp.eq.f32.partialorder %v176_v45, 8.507059e+37  ;;  %v846_v45 = vld [vmem:[%s1116_s2 + $0x5] ss:$0 sm:$0xff] }
 0x227   :  { %v866_v40 = vpop.eup %865 }
 0x228   :  { %v168_v41 = vmul.f32 %v866_v40, %v166_v39  ;;  %vm173_vm3 = vweird.f32 %v866_v40  ;;  %v868_v4 = vpop.eup %867  ;;  %v344_v39 = vld [vmem:[#allocation2 + $0xa0] sm:$0xff] }
 0x229   :  { %vm174_vm5 = vmor %vm172_vm4, %vm173_vm3  ;;  %v281_v5 = vmul.f32 32.0, %v868_v4  ;;  %vm285_vm9 = vweird.f32 %v868_v4  ;;  %369 = vmatpush.msra.mxu0 %v344_v39 }
 0x22a   :  { %v169_v42 = vsub.f32 1.0, %v168_v41 }
 0x22b   :  { %v282_v6 = vsub.f32 1.0, %v281_v5 }
 0x22c   :  { %v170_v44 = vmul.f32 %v866_v40, %v169_v42  ;;  %v845_v42 = vld [vmem:[%s1116_s2 + $0x4] ss:$0 sm:$0xff] }
 0x22d   :  { %v283_v7 = vmul.f32 %v868_v4, %v282_v6 }
 0x22e   :  { %v171_v46 = vadd.f32 %v866_v40, %v170_v44 }
 0x22f   :  { %v284_v8 = vadd.f32 %v868_v4, %v283_v7 }
 0x230   :  { %v175_v48 = vsel %vm174_vm5, %v866_v40, %v171_v46  ;;  %v343_v40 = vld [vmem:[#allocation2 + $0x98] sm:$0xff] }
 0x231   :  { %v180_v49 = vsel %vm177_vm6, %v179_v47, %v175_v48  ;;  %v1022_v9 = vsel %vm285_vm9, %v868_v4, %v284_v8  ;;  %370 = vmatpush.msra.mxu0 %v343_v40  ;;  %v342_v48 = vld [vmem:[#allocation2 + $0x90] sm:$0xff]  ;;  %v407_v4 = vld [vmem:[#allocation2 + $0x100] sm:$0xff] }
 0x232   :  { %v182_v50 = vmul.f32 %v862_v37, %v180_v49  ;;  %v211_v51 = vmul.f32 %v864_v38, %v180_v49  ;;  %v341_v49 = vld [vmem:[#allocation2 + $0x88] sm:$0xff] }
 0x233   :  { %371 = vmatpush.msra.mxu0 %v342_v48 }
 0x234   :  { %820 = vmatmul.msk.f32.vlgmr.msrb.gmra.mxu0 %vm183_vm7, %v182_v50  ;;  %822 = vmatmul.msk.f32.vlgmr.msrb.gmra.mxu1 %vm183_vm7, %v211_v51  ;;  %v340_v50 = vld [vmem:[#allocation2 + $0x80] sm:$0xff] }
 0x235   :  { %372 = vmatpush.msra.mxu0 %v341_v49  ;;  %v847_v51 = vld [vmem:[%s1116_s2 + $0x2] ss:$0 sm:$0xff] }
 0x237   :  { %373 = vmatpush.msra.mxu0 %v340_v50 }
 0x2b1   :  { %v208_v57 = vpop.f32.mrf.mxu0  ;;  %v232_v58 = vpop.f32.mrf.mxu1 }
 0x2b2   :  { %v238_v59 = vmul.f32 %v236_v55, %v208_v57  ;;  %v242_v60 = vmul.f32 %v240_v56, %v232_v58  ;;  %v848_v55 = vld [vmem:[%s1116_s2 + $0x3] ss:$0 sm:$0xff] }
 0x2b4   :  { %v243_v61 = vadd.f32 %v242_v60, %v238_v59 }
 0x2b6   :  { %823 = vmatmul.msk.f32.vlgmr.msra.gmra.mxu2 %vm37_vm0, %v243_v61 }
 0x2b7   :  { %830 = vmatpush.msk.msra.mxu2 %vm187_vm2, %v1002_v26 }
 0x339   :  { %v270_v63 = vpop.f32.mrf.mxu2 }
 0x33a   :  { %v271_v0 = vadd.f32 %v844_v62, %v270_v63 }
 0x33c   :  { %v273_v1 = vadd.f32 %v271_v0, %v972_v11 }
 0x33e   :  { %v277_v2 = vsel %vm276_vm8, %v273_v1, 0.0 }
 0x33f   :  { %278 = vadd.xlane.f32.xlu2 %v277_v2  ;;  %v409_v2 = vld [vmem:[#allocation2 + $0x110] sm:$0xff] }
 0x3b2   :  { %v279_v10 = vpop.xlane.xlu2 %278 }
 0x3b3   :  { %v287_v15 = vmul.f32 %v1022_v9, %v279_v10 }
 0x3b5   :  { %v288_v16 = vsub.f32 %v273_v1, %v287_v15  ;;  %v410_v1 = vld [vmem:[#allocation2 + $0x118] sm:$0xff] }
 0x3b6   :  { %428 = vmatpush.msra.mxu1 %v410_v1 }
 0x3b7   :  { %v289_v17 = vmul.f32 %v288_v16, %v288_v16 }
 0x3b8   :  { %429 = vmatpush.msra.mxu1 %v409_v2  ;;  %v852_v2 = vld [vmem:[%s1116_s2 + $0x9] ss:$0 sm:$0xff] }
 0x3b9   :  { %v290_v11 = vsel %vm276_vm8, %v289_v17, 0.0 }
 0x3ba   :  { %291 = vadd.xlane.f32.xlu2 %v290_v11  ;;  %430 = vmatpush.msra.mxu1 %v408_v3 }
 0x3bc   :  { %431 = vmatpush.msra.mxu1 %v407_v4 }
 0x3be   :  { %828 = vmatpush.msk.msrb.mxu1 %vm187_vm2, %v1002_v26 }
 0x42d   :  { %v292_v27 = vpop.xlane.xlu2 %291 }
 0x42e   :  { %v293_v28 = vmul.f32 %v292_v27, %v1022_v9 }
 0x430   :  { %v294_v30 = vadd.f32 1e-05, %v293_v28 }
 0x432   :  { %869 = vrsqrt.f32 %v294_v30  ;;  %vm301_vm11 = vweird.f32 %v294_v30 }
 0x438   :  { %v870_v13 = vpop.eup %869 }
 0x439   :  { %v296_v35 = vmul.f32 %v870_v13, %v294_v30  ;;  %vm302_vm10 = vweird.f32 %v870_v13 }
 0x43a   :  { %vm303_vm12 = vmor %vm301_vm11, %vm302_vm10  ;;  %vm773_vm11 = vcmask 130048  }
 0x43b   :  { %v297_v37 = vmul.f32 %v870_v13, %v296_v35 }
 0x43d   :  { %v298_v38 = vmul.f32 0.5, %v297_v37 }
 0x43f   :  { %v299_v21 = vsub.f32 1.5, %v298_v38 }
 0x441   :  { %v300_v41 = vmul.f32 %v870_v13, %v299_v21 }
 0x443   :  { %v304_v43 = vsel %vm303_vm12, %v870_v13, %v300_v41 }
 0x444   :  { %v305_v44 = vmul.f32 %v304_v43, %v288_v16 }
 0x446   :  { %v307_v46 = vmul.f32 %v845_v42, %v305_v44 }
 0x448   :  { %v309_v47 = vadd.f32 %v846_v45, %v307_v46 }
 0x44a   :  { %824 = vmatmul.msk.f32.vlgmr.msra.gmra.mxu3 %vm37_vm0, %v309_v47 }
 0x4cd   :  { %v336_v52 = vpop.f32.mrf.mxu3 }
 0x4ce   :  { %v337_v53 = vadd.f32 %v847_v51, %v336_v52 }
 0x4d0   :  { %v339_v54 = vmax.f32 %v337_v53, 0.0 }
 0x4d2   :  { %374 = vmatmul.f32.vlgmr.msra.gmra.mxu0 %v339_v54 }
 0x54f   :  { %v375_v56 = vpop.f32.mrf.mxu0 }
 0x550   :  { %v376_v57 = vadd.f32 %v848_v55, %v375_v56  ;;  %v582_v55 = vld [vmem:[#allocation2 + $0x138] sm:$0xff]  ;;  %v581_v56 = vld [vmem:[#allocation2 + $0x130] sm:$0xff] }
 0x551   :  { %600 = vmatpush.msra.mxu3 %v582_v55 }
 0x552   :  { %v378_v58 = vadd.f32 %v376_v57, %v309_v47  ;;  %v580_v57 = vld [vmem:[#allocation2 + $0x128] sm:$0xff] }
 0x553   :  { %601 = vmatpush.msra.mxu3 %v581_v56 }
 0x554   :  { %v381_v59 = vsel %vm276_vm8, %v378_v58, 0.0 }
 0x555   :  { %382 = vadd.xlane.f32.xlu0 %v381_v59  ;;  %602 = vmatpush.msra.mxu3 %v580_v57 }
 0x5c8   :  { %v383_v60 = vpop.xlane.xlu0 %382 }
 0x5c9   :  { %v384_v61 = vmul.f32 %v383_v60, %v1022_v9 }
 0x5cb   :  { %v385_v62 = vsub.f32 %v378_v58, %v384_v61  ;;  %v579_v58 = vld [vmem:[#allocation2 + $0x120] sm:$0xff] }
 0x5cc   :  { %603 = vmatpush.msra.mxu3 %v579_v58 }
 0x5cd   :  { %v386_v63 = vmul.f32 %v385_v62, %v385_v62 }
 0x5cf   :  { %v387_v0 = vsel %vm276_vm8, %v386_v63, 0.0 }
 0x5d0   :  { %388 = vadd.xlane.f32.xlu1 %v387_v0 }
 0x643   :  { %v389_v5 = vpop.xlane.xlu1 %388 }
 0x644   :  { %v390_v6 = vmul.f32 %v389_v5, %v1022_v9 }
 0x646   :  { %v391_v7 = vadd.f32 1e-05, %v390_v6 }
 0x648   :  { %871 = vrsqrt.f32 %v391_v7  ;;  %vm398_vm14 = vweird.f32 %v391_v7 }
 0x64e   :  { %v872_v8 = vpop.eup %871 }
 0x64f   :  { %v393_v10 = vmul.f32 %v872_v8, %v391_v7  ;;  %vm399_vm13 = vweird.f32 %v872_v8 }
 0x650   :  { %vm400_vm15 = vmor %vm398_vm14, %vm399_vm13 }
 0x651   :  { %v394_v15 = vmul.f32 %v872_v8, %v393_v10 }
 0x653   :  { %v395_v16 = vmul.f32 0.5, %v394_v15 }
 0x655   :  { %v396_v17 = vsub.f32 1.5, %v395_v16 }
 0x657   :  { %v397_v11 = vmul.f32 %v872_v8, %v396_v17  ;;  %v640_v17 = vld [vmem:[#allocation2 + $0x158] sm:$0xff] }
 0x659   :  { %v401_v19 = vsel %vm400_vm15, %v872_v8, %v397_v11  ;;  %v639_v11 = vld [vmem:[#allocation2 + $0x150] sm:$0xff] }
 0x65a   :  { %v402_v26 = vmul.f32 %v401_v19, %v385_v62  ;;  %v637_v19 = vld [vmem:[#allocation2 + $0x140] sm:$0xff] }
 0x65c   :  { %v404_v22 = vmul.f32 %v849_v18, %v402_v26  ;;  %v638_v18 = vld [vmem:[#allocation2 + $0x148] sm:$0xff]  ;;  %v682_v26 = vld [vmem:[#allocation2 + $0x1d8] sm:$0xff] }
 0x65e   :  { %v1056_v23 = vadd.f32 %v850_v20, %v404_v22  ;;  %v681_v20 = vld [vmem:[#allocation2 + $0x1d0] sm:$0xff]  ;;  %v680_v22 = vld [vmem:[#allocation2 + $0x1c8] sm:$0xff] }
 0x660   :  { %825 = vmatmul.msk.f32.vlgmr.msra.gmra.mxu1 %vm37_vm0, %v1056_v23 }
 0x661   :  { %658 = vmatpush.msra.mxu1 %v640_v17  ;;  %v857_v17 = vld [vmem:[%s1116_s2 + $0xe] ss:$0 sm:$0xff] }
 0x663   :  { %659 = vmatpush.msra.mxu1 %v639_v11 }
 0x665   :  { %660 = vmatpush.msra.mxu1 %v638_v18 }
 0x667   :  { %661 = vmatpush.msra.mxu1 %v637_v19 }
 0x6dd   :  { %v433_v25 = vpop.f32.mrf.mxu1 }
 0x6de   :  { %v434_v27 = vadd.f32 %v851_v24, %v433_v25  ;;  %v679_v25 = vld [vmem:[#allocation2 + $0x1c0] sm:$0xff] }
 0x6e0   :  { %442 = vrot.lane.b32.xlu2 %v434_v27, %s939_s24  ;;  %v437_v28 = vrot.slane %v434_v27, 2  ;;  %v439_v29 = vrot.slane %v434_v27, 6 }
 0x6e2   :  { %v441_v30 = vsel %vm100_vm1, %v437_v28, %v439_v29  ;;  %v678_v28 = vld [vmem:[#allocation2 + $0x1b8] sm:$0xff]  ;;  %v677_v29 = vld [vmem:[#allocation2 + $0x1b0] sm:$0xff] }
 0x6e8   :  { %471 = vrot.lane.b32.xlu2 %v441_v30, %s939_s24 }
 0x6f0   :  { %570 = vrot.lane.b32.xlu2 %v434_v27, %s938_s23 }
 0x6f8   :  { %574 = vrot.lane.b32.xlu2 %v441_v30, %s938_s23  ;;  %v676_v30 = vld [vmem:[#allocation2 + $0x1a8] sm:$0xff] }
 0x73a   :  { %v443_v31 = vpop.permute.xlu2 %442 }
 0x73b   :  { %v445_v32 = vmul.f32 %v443_v31, %v434_v27  ;;  %v675_v31 = vld [vmem:[#allocation2 + $0x1a0] sm:$0xff] }
 0x73d   :  { %826 = vmatmul.msk.f32.vlgmr.msrb.gmra.mxu2 %vm37_vm0, %v445_v32 }
 0x73e   :  { %685 = vmatpush.msrb.mxu2 %v682_v26 }
 0x740   :  { %686 = vmatpush.msrb.mxu2 %v681_v20 }
 0x742   :  { %v472_v12 = vpop.permute.xlu2 %471  ;;  %687 = vmatpush.msrb.mxu2 %v680_v22 }
 0x743   :  { %v474_v33 = vmul.f32 %v472_v12, %v434_v27  ;;  %v674_v12 = vld [vmem:[#allocation2 + $0x198] sm:$0xff] }
 0x744   :  { %688 = vmatpush.msrb.mxu2 %v679_v25  ;;  %v859_v25 = vld [vmem:[%s1116_s2 + $0x10] ss:$0 sm:$0xff] }
 0x745   :  { %827 = vmatmul.msk.f32.vlgmr.msrb.gmra.mxu3 %vm37_vm0, %v474_v33 }
 0x746   :  { %689 = vmatpush.msrb.mxu2 %v678_v28 }
 0x748   :  { %690 = vmatpush.msrb.mxu2 %v677_v29 }
 0x74a   :  { %v571_v59 = vpop.permute.xlu2 %570  ;;  %691 = vmatpush.msrb.mxu2 %v676_v30  ;;  %v860_v30 = vld [vmem:[%s1116_s2 + $0x11] ss:$0 sm:$0xff] }
 0x74c   :  { %692 = vmatpush.msrb.mxu2 %v675_v31 }
 0x74e   :  { %693 = vmatpush.msrb.mxu2 %v674_v12 }
 0x752   :  { %v575_v61 = vpop.permute.xlu2 %574 }
 0x7c0   :  { %v466_v13 = vpop.f32.mrf.mxu2 }
 0x7c1   :  { %v469_v35 = vmul.f32 0.35355338, %v466_v13  ;;  %v673_v13 = vld [vmem:[#allocation2 + $0x190] sm:$0xff] }
 0x7c2   :  { %694 = vmatpush.msrb.mxu2 %v673_v13 }
 0x7c8   :  { %v495_v34 = vpop.f32.mrf.mxu3 }
 0x7c9   :  { %v498_v36 = vmul.f32 0.35355338, %v495_v34 }
 0x7cb   :  { %v499_v37 = vmax.f32 %v469_v35, %v498_v36 }
 0x7cd   :  { %v500_v14 = vsub.f32 %v469_v35, %v499_v37  ;;  %v503_v38 = vsub.f32 %v498_v36, %v499_v37  ;;  %v672_v35 = vld [vmem:[#allocation2 + $0x188] sm:$0xff]  ;;  %v671_v37 = vld [vmem:[#allocation2 + $0x180] sm:$0xff] }
 0x7ce   :  { %695 = vmatpush.msrb.mxu2 %v672_v35 }
 0x7cf   :  { %v501_v39 = vmul.f32 1.442695, %v500_v14  ;;  %v504_v21 = vmul.f32 1.442695, %v503_v38  ;;  %v670_v38 = vld [vmem:[#allocation2 + $0x178] sm:$0xff] }
 0x7d0   :  { %696 = vmatpush.msrb.mxu2 %v671_v37 }
 0x7d1   :  { %873 = vpow2.f32 %v501_v39 }
 0x7d2   :  { %875 = vpow2.f32 %v504_v21  ;;  %v853_v21 = vld [vmem:[%s1116_s2 + $0xc] ss:$0 sm:$0xff]  ;;  %697 = vmatpush.msrb.mxu2 %v670_v38 }
 0x7d7   :  { %v874_v40 = vpop.eup %873 }
 0x7d8   :  { %v876_v41 = vpop.eup %875 }
 0x7d9   :  { %v506_v42 = vadd.f32 %v876_v41, %v874_v40 }
 0x7db   :  { %877 = vrcp.f32 %v506_v42  ;;  %v518_v46 = vand.u32 2147483648, %v506_v42  ;;  %v516_v48 = vand.u32 2147483647, %v506_v42  ;;  %vm512_vm2 = vweird.f32 %v506_v42 }
 0x7dd   :  { %v519_v50 = vor.u32 1.1754944e-38, %v518_v46  ;;  %vm517_vm4 = vcmp.eq.f32.partialorder %v516_v48, 8.507059e+37  ;;  %v668_v46 = vld [vmem:[#allocation2 + $0x168] sm:$0xff] }
 0x7de   :  { %v855_v48 = vld [vmem:[%s1116_s2 + $0xa] ss:$0 sm:$0xff] }
 0x7e1   :  { %v878_v43 = vpop.eup %877 }
 0x7e2   :  { %v508_v44 = vmul.f32 %v878_v43, %v506_v42  ;;  %vm513_vm1 = vweird.f32 %v878_v43  ;;  %v854_v42 = vld [vmem:[%s1116_s2 + $0xd] ss:$0 sm:$0xff] }
 0x7e3   :  { %vm514_vm3 = vmor %vm512_vm2, %vm513_vm1 }
 0x7e4   :  { %v509_v45 = vsub.f32 1.0, %v508_v44 }
 0x7e6   :  { %v510_v47 = vmul.f32 %v878_v43, %v509_v45  ;;  %v669_v45 = vld [vmem:[#allocation2 + $0x170] sm:$0xff] }
 0x7e7   :  { %698 = vmatpush.msrb.mxu2 %v669_v45 }
 0x7e8   :  { %v511_v49 = vadd.f32 %v878_v43, %v510_v47  ;;  %v667_v47 = vld [vmem:[#allocation2 + $0x160] sm:$0xff] }
 0x7e9   :  { %699 = vmatpush.msrb.mxu2 %v668_v46 }
 0x7ea   :  { %v515_v51 = vsel %vm514_vm3, %v878_v43, %v511_v49 }
 0x7eb   :  { %v520_v52 = vsel %vm517_vm4, %v519_v50, %v515_v51  ;;  %700 = vmatpush.msrb.mxu2 %v667_v47 }
 0x7ec   :  { %v546_v53 = vmul.f32 %v876_v41, %v520_v52  ;;  %v522_v54 = vmul.f32 %v874_v40, %v520_v52  ;;  %v856_v52 = vld [vmem:[%s1116_s2 + $0xb] ss:$0 sm:$0xff] }
 0x7ee   :  { %829 = vmatmul.msk.f32.vlgmr.msrb.gmra.mxu1 %vm183_vm7, %v522_v54  ;;  %831 = vmatmul.msk.f32.vlgmr.msra.gmra.mxu2 %vm183_vm7, %v546_v53 }
 0x86b   :  { %v543_v60 = vpop.f32.mrf.mxu1 }
 0x86c   :  { %v573_v63 = vmul.f32 %v571_v59, %v543_v60 }
 0x871   :  { %v567_v62 = vpop.f32.mrf.mxu2 }
 0x872   :  { %v577_v0 = vmul.f32 %v575_v61, %v567_v62  ;;  %v742_v62 = vld [vmem:[#allocation2 + $0x1f8] sm:$0xff] }
 0x873   :  { %760 = vmatpush.msrb.mxu3 %v742_v62 }
 0x874   :  { %v578_v1 = vadd.f32 %v577_v0, %v573_v63  ;;  %v741_v63 = vld [vmem:[#allocation2 + $0x1f0] sm:$0xff]  ;;  %v740_v0 = vld [vmem:[#allocation2 + $0x1e8] sm:$0xff] }
 0x875   :  { %761 = vmatpush.msrb.mxu3 %v741_v63 }
 0x876   :  { %832 = vmatmul.msk.f32.vlgmr.msra.gmra.mxu3 %vm37_vm0, %v578_v1  ;;  %v739_v1 = vld [vmem:[#allocation2 + $0x1e0] sm:$0xff] }
 0x877   :  { %762 = vmatpush.msrb.mxu3 %v740_v0 }
 0x879   :  { %763 = vmatpush.msrb.mxu3 %v739_v1 }
 0x8f9   :  { %v605_v3 = vpop.f32.mrf.mxu3 }
 0x8fa   :  { %v606_v4 = vadd.f32 %v852_v2, %v605_v3 }
 0x8fc   :  { %v608_v5 = vadd.f32 %v606_v4, %v1056_v23 }
 0x8fe   :  { %v611_v6 = vsel %vm276_vm8, %v608_v5, 0.0 }
 0x8ff   :  { %612 = vadd.xlane.f32.xlu0 %v611_v6 }
 0x972   :  { %v613_v7 = vpop.xlane.xlu0 %612 }
 0x973   :  { %v614_v8 = vmul.f32 %v613_v7, %v1022_v9 }
 0x975   :  { %v615_v10 = vsub.f32 %v608_v5, %v614_v8  ;;  %v770_v5 = vld [vmem:[#allocation2 + $0x208] sm:$0xff] }
 0x976   :  { %791 = vmatpush.msrb.mxu1 %v770_v5 }
 0x977   :  { %v616_v15 = vmul.f32 %v615_v10, %v615_v10 }
 0x979   :  { %v617_v16 = vsel %vm276_vm8, %v616_v15, 0.0 }
 0x97a   :  { %618 = vadd.xlane.f32.xlu1 %v617_v16 }
 0x9ed   :  { %v619_v23 = vpop.xlane.xlu1 %618 }
 0x9ee   :  { %v620_v24 = vmul.f32 %v619_v23, %v1022_v9 }
 0x9f0   :  { %v621_v27 = vadd.f32 1e-05, %v620_v24  ;;  %v769_v24 = vld [vmem:[#allocation2 + $0x200] sm:$0xff] }
 0x9f1   :  { %792 = vmatpush.msrb.mxu1 %v769_v24 }
 0x9f2   :  { %879 = vrsqrt.f32 %v621_v27  ;;  %vm628_vm6 = vweird.f32 %v621_v27 }
 0x9f8   :  { %v880_v32 = vpop.eup %879 }
 0x9f9   :  { %v623_v33 = vmul.f32 %v880_v32, %v621_v27  ;;  %vm629_vm5 = vweird.f32 %v880_v32 }
 0x9fa   :  { %vm630_vm7 = vmor %vm628_vm6, %vm629_vm5 }
 0x9fb   :  { %v624_v34 = vmul.f32 %v880_v32, %v623_v33 }
 0x9fd   :  { %v625_v36 = vmul.f32 0.5, %v624_v34 }
 0x9ff   :  { %v626_v14 = vsub.f32 1.5, %v625_v36 }
 0xa01   :  { %v627_v39 = vmul.f32 %v880_v32, %v626_v14 }
 0xa03   :  { %v631_v40 = vsel %vm630_vm7, %v880_v32, %v627_v39 }
 0xa04   :  { %v632_v41 = vmul.f32 %v631_v40, %v615_v10 }
 0xa06   :  { %v634_v43 = vmul.f32 %v853_v21, %v632_v41 }
 0xa08   :  { %v636_v44 = vadd.f32 %v854_v42, %v634_v43 }
 0xa0a   :  { %833 = vmatmul.msk.f32.vlgmr.msra.gmra.mxu1 %vm37_vm0, %v636_v44 }
 0xa87   :  { %v663_v49 = vpop.f32.mrf.mxu1 }
 0xa88   :  { %v664_v50 = vadd.f32 %v855_v48, %v663_v49 }
 0xa8a   :  { %v666_v51 = vmax.f32 %v664_v50, 0.0 }
 0xa8c   :  { %701 = vmatmul.f32.vlgmr.msrb.gmra.mxu2 %v666_v51 }
 0xb0f   :  { %v702_v53 = vpop.f32.mrf.mxu2 }
 0xb10   :  { %v703_v54 = vadd.f32 %v856_v52, %v702_v53 }
 0xb12   :  { %v705_v55 = vadd.f32 %v703_v54, %v636_v44 }
 0xb14   :  { %v708_v56 = vsel %vm276_vm8, %v705_v55, 0.0 }
 0xb15   :  { %709 = vadd.xlane.f32.xlu2 %v708_v56 }
 0xb88   :  { %v710_v57 = vpop.xlane.xlu2 %709 }
 0xb89   :  { %v711_v58 = vmul.f32 %v710_v57, %v1022_v9 }
 0xb8b   :  { %v712_v59 = vsub.f32 %v705_v55, %v711_v58 }
 0xb8d   :  { %v713_v60 = vmul.f32 %v712_v59, %v712_v59 }
 0xb8f   :  { %v714_v61 = vsel %vm276_vm8, %v713_v60, 0.0 }
 0xb90   :  { %715 = vadd.xlane.f32.xlu0 %v714_v61 }
 0xc03   :  { %v716_v2 = vpop.xlane.xlu0 %715 }
 0xc04   :  { %v717_v3 = vmul.f32 %v716_v2, %v1022_v9  ;;  %v858_v9 = vld [vmem:[%s1116_s2 + $0xf] ss:$0 sm:$0xff] }
 0xc06   :  { %v718_v4 = vadd.f32 1e-05, %v717_v3 }
 0xc08   :  { %881 = vrsqrt.f32 %v718_v4  ;;  %vm725_vm9 = vweird.f32 %v718_v4 }
 0xc0e   :  { %v882_v6 = vpop.eup %881 }
 0xc0f   :  { %v720_v7 = vmul.f32 %v882_v6, %v718_v4  ;;  %vm726_vm8 = vweird.f32 %v882_v6 }
 0xc10   :  { %vm727_vm10 = vmor %vm725_vm9, %vm726_vm8 }
 0xc11   :  { %v721_v8 = vmul.f32 %v882_v6, %v720_v7 }
 0xc13   :  { %v722_v10 = vmul.f32 0.5, %v721_v8 }
 0xc15   :  { %v723_v15 = vsub.f32 1.5, %v722_v10 }
 0xc17   :  { %v724_v16 = vmul.f32 %v882_v6, %v723_v15 }
 0xc19   :  { %v728_v11 = vsel %vm727_vm10, %v882_v6, %v724_v16 }
 0xc1a   :  { %v729_v18 = vmul.f32 %v728_v11, %v712_v59 }
 0xc1c   :  { %v731_v19 = vmul.f32 %v857_v17, %v729_v18 }
 0xc1e   :  { %v733_v26 = vadd.f32 %v858_v9, %v731_v19 }
 0xc20   :  { %v735_v20 = vrot.slane %v733_v26, 2 }
 0xc22   :  { %v737_v22 = vadd.f32 %v735_v20, %v733_v26 }
 0xc24   :  { %v738_v23 = vmul.f32 0.5, %v737_v22 }
 0xc26   :  { %834 = vmatmul.msk.f32.vlgmr.msrb.gmra.mxu3 %vm37_vm0, %v738_v23 }
 0xca9   :  { %v765_v27 = vpop.f32.mrf.mxu3 }
 0xcaa   :  { %v766_v28 = vadd.f32 %v859_v25, %v765_v27 }
 0xcac   :  { %v768_v29 = vmax.f32 %v766_v28, 0.0 }
 0xcae   :  { %835 = vmatmul.msk.f32.vlgmr.msrb.gmra.mxu1 %vm773_vm11, %v768_v29 }
 0xd2b   :  { %v794_v31 = vpop.f32.mrf.mxu1 }
 0xd2c   :  { %v795_v32 = vadd.f32 %v860_v30, %v794_v31 }
 0xd2e   :  { %797 = vst [vmem:[#allocation5] sm:$0x3] %v795_v32 }
 0xd2f   :  { %808 = dma.vmem_to_hbm [thread:$0]  %s804_s4, 32, %s806_s7, [#allocation4]  }
 0xd30   :  { %933 = dma.done.wait [#allocation4], 32  }
 0xd31   :  { %934 = vsyncadd [#allocation4], 4294967264 }
 0xd32   :  { %813 = vsyncpa [#allocation3], 1 }
 0xd33   :  { %814 = vsyncpa [#allocation4], 1 }

</bundles_post_ra>
